<compile_context>
chip_gen: v6e
topology: v6e:2x2x1
jax: 0.10.0
libtpu: 0.0.40
codegen_flags: <defaults>
</compile_context>

<pallas_src>
import jax
import jax.numpy as jnp
from jax.experimental import pallas as pl
from jax.experimental.pallas import tpu as pltpu

_SQRT_2_OVER_PI = 0.7978845608028654


def _gelu_tanh(x):
    return 0.5 * x * (1.0 + jnp.tanh(_SQRT_2_OVER_PI * (x + 0.044715 * x * x * x)))


def _mlp_kernel(x_ref, w1_ref, b1_ref, w2_ref, b2_ref, o_ref):
    # x_ref: (TM, L) in the activation dtype; w*_ref: (L, L) in (in, out) layout
    # (bf16 when activations are bf16 -> MXU-native); b*_ref: (1, L) f32.
    x = x_ref[...]
    h = jnp.dot(x, w1_ref[...], preferred_element_type=jnp.float32) + b1_ref[...]
    h = _gelu_tanh(h)                                   # f32 elementwise
    y = jnp.dot(h.astype(w2_ref.dtype), w2_ref[...],
                preferred_element_type=jnp.float32) + b2_ref[...]
    o_ref[...] = y.astype(o_ref.dtype)


def _block_diag(w, p):
    # w: (d, d) -> block-diagonal (p*d, p*d) with p copies of w on the diagonal.
    d = w.shape[0]
    eye = jnp.eye(p, dtype=w.dtype)
    return (eye[:, None, :, None] * w[None, :, None, :]).reshape(p * d, p * d)


def conv3d_forward(x, w1, b1, w2, b2, *, target_block_bytes=2 * 1024 * 1024):
    """Fused forward pass of Conv3d_Forward.

    x : (b, nx, ny, nz, ws1, ws2, ws3, d)  -- windowed layout, channels last.
    w1, w2 : (d_out, d_in) Conv3d 1x1x1 weights (kernel dims squeezed).
    b1, b2 : (d,) biases.
    Returns an array of the same shape/dtype as x.
    """
    orig_shape = x.shape
    orig_dtype = x.dtype
    d = orig_shape[-1]
    t = 1
    for s in orig_shape[:-1]:
        t *= s

    # Lane-dense packing: group p consecutive tokens per row so the lane dim is
    # 128-wide (free reshape: tokens are contiguous in the flattened layout).
    p = 1
    if d < 128 and 128 % d == 0:
        cand = 128 // d
        if t % cand == 0:
            p = cand
    rows = t // p
    lanes = p * d

    x2 = x.reshape(rows, lanes)                          # free view, no pad, no cast

    # Weights in the MXU-native dtype for the activations (bf16 stays bf16),
    # (in, out) layout so the kernel does plain X @ W.  Biases stay f32.
    w_dtype = jnp.bfloat16 if orig_dtype == jnp.bfloat16 else jnp.float32
    w1t = jnp.asarray(w1, w_dtype).T
    w2t = jnp.asarray(w2, w_dtype).T
    if p > 1:
        w1t = _block_diag(w1t, p)
        w2t = _block_diag(w2t, p)
    b1r = jnp.tile(jnp.asarray(b1, jnp.float32).reshape(1, d), (1, p))
    b2r = jnp.tile(jnp.asarray(b2, jnp.float32).reshape(1, d), (1, p))

    # Row tile: ~target_block_bytes per activation block, multiple of 8 sublanes.
    itemsize = jnp.dtype(orig_dtype).itemsize
    tm = target_block_bytes // max(1, lanes * itemsize)
    tm = max(8, (tm // 8) * 8)
    if tm >= rows:
        if rows >= 16:
            # Keep >= 2 grid steps so the parallel axis shards across v7x's 2 TCs.
            tm = max(8, ((pl.cdiv(rows, 2) + 7) // 8) * 8)
        else:
            tm = rows                                    # full-dim block (allowed)
    grid_steps = pl.cdiv(rows, tm)                       # ragged last block is OK

    # VMEM budget: 2x double-buffered in + out activation blocks, weights
    # (assume pipeline may double-buffer them too), plus slack.  Cap at 48 MiB
    # so we stay safe on v7x's 64 MiB physical VMEM.
    w_itemsize = jnp.dtype(w_dtype).itemsize
    block_bytes = tm * lanes * itemsize
    weight_bytes = 2 * lanes * lanes * w_itemsize
    vmem_needed = 4 * block_bytes + 2 * weight_bytes + (1 << 20)
    vmem_limit = int(min(48 * 1024 * 1024, max(32 * 1024 * 1024, vmem_needed)))

    cost = pl.CostEstimate(
        flops=4 * rows * lanes * lanes,                  # two (rows,L)x(L,L) matmuls
        transcendentals=t * d,                           # one tanh per element
        bytes_accessed=2 * t * d * itemsize + weight_bytes,
    )

    out = pl.pallas_call(
        _mlp_kernel,
        out_shape=jax.ShapeDtypeStruct((rows, lanes), orig_dtype),
        grid_spec=pltpu.PrefetchScalarGridSpec(
            num_scalar_prefetch=0,
            grid=(grid_steps,),
            in_specs=[
                pl.BlockSpec((tm, lanes), lambda i: (i, 0)),      # activations: tiled
                pl.BlockSpec((lanes, lanes), lambda i: (0, 0)),   # W1: resident
                pl.BlockSpec((1, lanes), lambda i: (0, 0)),       # b1: resident
                pl.BlockSpec((lanes, lanes), lambda i: (0, 0)),   # W2: resident
                pl.BlockSpec((1, lanes), lambda i: (0, 0)),       # b2: resident
            ],
            out_specs=pl.BlockSpec((tm, lanes), lambda i: (i, 0)),
        ),
        compiler_params=pltpu.CompilerParams(
            dimension_semantics=("parallel",),
            vmem_limit_bytes=vmem_limit),
        cost_estimate=cost,
    )(x2, w1t, b1r, w2t, b2r)

    return out.reshape(orig_shape)


def conv3d_forward_reference(x, w1, b1, w2, b2):
    """Faithful JAX port of the PyTorch module (explicit rearranges + 1x1x1 convs)."""
    b, nx, ny, nz, ws1, ws2, ws3, d = x.shape
    # Rearrange 'b x y z w1 w2 w3 d -> b d (x w1) (y w2) (z w3)'
    xr = jnp.transpose(x, (0, 7, 1, 4, 2, 5, 3, 6)).reshape(
        b, d, nx * ws1, ny * ws2, nz * ws3)
    # Conv3d(d, d, 1) == per-voxel linear over channels.
    h = jnp.einsum('bcxyz,oc->boxyz', xr, w1) + b1[None, :, None, None, None]
    h = _gelu_tanh(h)
    y = jnp.einsum('bcxyz,oc->boxyz', h, w2) + b2[None, :, None, None, None]
    # Rearrange 'b d (x w1) (y w2) (z w3) -> b x y z w1 w2 w3 d'
    yr = y.reshape(b, d, nx, ws1, ny, ws2, nz, ws3)
    return jnp.transpose(yr, (0, 2, 4, 6, 3, 5, 7, 1))


if __name__ == "__main__":
    key = jax.random.PRNGKey(0)
    kx, kw1, kb1, kw2, kb2 = jax.random.split(key, 5)

    # Small windowed volume: batch=2, 2x2x2 window grid, window_size=(2,2,2),
    # dim=32  ->  128 tokens of width 32.
    b, nx, ny, nz = 2, 2, 2, 2
    ws1, ws2, ws3 = 2, 2, 2
    dim = 32

    x = jax.random.normal(kx, (b, nx, ny, nz, ws1, ws2, ws3, dim),
                          dtype=jnp.float32)
    scale = 1.0 / jnp.sqrt(jnp.float32(dim))
    w1 = scale * jax.random.normal(kw1, (dim, dim), dtype=jnp.float32)
    b1 = 0.1 * jax.random.normal(kb1, (dim,), dtype=jnp.float32)
    w2 = scale * jax.random.normal(kw2, (dim, dim), dtype=jnp.float32)
    b2 = 0.1 * jax.random.normal(kb2, (dim,), dtype=jnp.float32)

    y = conv3d_forward(x, w1, b1, w2, b2)
    y = jax.block_until_ready(y)

    y_ref = conv3d_forward_reference(x, w1, b1, w2, b2)
    assert y.shape == x.shape and y.dtype == x.dtype
    assert jnp.allclose(y, y_ref, rtol=1e-4, atol=1e-4), "mismatch vs reference"

    print("KERNEL_OK")
</pallas_src>

<mosaic_0001>
module attributes {stable_mosaic.version = 11 : i64} {
  func.func @_mlp_kernel(%arg0: i32, %arg1: memref<16x128xf32, #tpu.memory_space<vmem>>, %arg2: memref<128x128xf32, #tpu.memory_space<vmem>>, %arg3: memref<1x128xf32, #tpu.memory_space<vmem>>, %arg4: memref<128x128xf32, #tpu.memory_space<vmem>>, %arg5: memref<1x128xf32, #tpu.memory_space<vmem>>, %arg6: memref<16x128xf32, #tpu.memory_space<vmem>>) attributes {dimension_semantics = [#tpu.dimension_semantics<parallel>], iteration_bounds = array<i64: 2>, scalar_prefetch = 0 : i64, scratch_operands = 0 : i64, tpu.core_type = #tpu.core_type<tc>, window_params = [{transform_indices = @transform_0, window_bounds = array<i64: 16, 128>}, {pipeline_mode = #tpu.pipeline_mode<synchronous>, transform_indices = @transform_1, window_bounds = array<i64: 128, 128>}, {pipeline_mode = #tpu.pipeline_mode<synchronous>, transform_indices = @transform_2, window_bounds = array<i64: 1, 128>}, {pipeline_mode = #tpu.pipeline_mode<synchronous>, transform_indices = @transform_3, window_bounds = array<i64: 128, 128>}, {pipeline_mode = #tpu.pipeline_mode<synchronous>, transform_indices = @transform_4, window_bounds = array<i64: 1, 128>}, {transform_indices = @transform_5, window_bounds = array<i64: 16, 128>}]} {
    %c0 = arith.constant 0 : index
    %c0_0 = arith.constant 0 : index
    %0 = vector.load %arg1[%c0, %c0_0] : memref<16x128xf32, #tpu.memory_space<vmem>>, vector<16x128xf32>
    %c0_1 = arith.constant 0 : index
    %c0_2 = arith.constant 0 : index
    %1 = vector.load %arg2[%c0_1, %c0_2] : memref<128x128xf32, #tpu.memory_space<vmem>>, vector<128x128xf32>
    %cst = arith.constant dense<0.000000e+00> : vector<16x128xf32>
    %2 = tpu.matmul %0, %1, %cst {dimension_numbers = #tpu.dot_dimension_numbers<[1], [0], [0], [1], [0, 0, 1, 1], [], []>} : vector<16x128xf32>, vector<128x128xf32>, vector<16x128xf32> -> vector<16x128xf32>
    %c0_3 = arith.constant 0 : index
    %c0_4 = arith.constant 0 : index
    %3 = vector.load %arg3[%c0_3, %c0_4] : memref<1x128xf32, #tpu.memory_space<vmem>>, vector<1x128xf32>
    %4 = vector.broadcast %3 : vector<1x128xf32> to vector<16x128xf32>
    %5 = arith.addf %2, %4 : vector<16x128xf32>
    %cst_5 = arith.constant 5.000000e-01 : f32
    %6 = vector.broadcast %cst_5 : f32 to vector<16x128xf32>
    %7 = arith.mulf %6, %5 : vector<16x128xf32>
    %cst_6 = arith.constant 4.471500e-02 : f32
    %8 = vector.broadcast %cst_6 : f32 to vector<16x128xf32>
    %9 = arith.mulf %8, %5 : vector<16x128xf32>
    %10 = arith.mulf %9, %5 : vector<16x128xf32>
    %11 = arith.mulf %10, %5 : vector<16x128xf32>
    %12 = arith.addf %5, %11 : vector<16x128xf32>
    %cst_7 = arith.constant 0.797884583 : f32
    %13 = vector.broadcast %cst_7 : f32 to vector<16x128xf32>
    %14 = arith.mulf %13, %12 : vector<16x128xf32>
    %15 = math.tanh %14 : vector<16x128xf32>
    %cst_8 = arith.constant 1.000000e+00 : f32
    %16 = vector.broadcast %cst_8 : f32 to vector<16x128xf32>
    %17 = arith.addf %16, %15 : vector<16x128xf32>
    %18 = arith.mulf %7, %17 : vector<16x128xf32>
    %c0_9 = arith.constant 0 : index
    %c0_10 = arith.constant 0 : index
    %19 = vector.load %arg4[%c0_9, %c0_10] : memref<128x128xf32, #tpu.memory_space<vmem>>, vector<128x128xf32>
    %cst_11 = arith.constant dense<0.000000e+00> : vector<16x128xf32>
    %20 = tpu.matmul %18, %19, %cst_11 {dimension_numbers = #tpu.dot_dimension_numbers<[1], [0], [0], [1], [0, 0, 1, 1], [], []>} : vector<16x128xf32>, vector<128x128xf32>, vector<16x128xf32> -> vector<16x128xf32>
    %c0_12 = arith.constant 0 : index
    %c0_13 = arith.constant 0 : index
    %21 = vector.load %arg5[%c0_12, %c0_13] : memref<1x128xf32, #tpu.memory_space<vmem>>, vector<1x128xf32>
    %22 = vector.broadcast %21 : vector<1x128xf32> to vector<16x128xf32>
    %23 = arith.addf %20, %22 : vector<16x128xf32>
    %c0_14 = arith.constant 0 : index
    %c0_15 = arith.constant 0 : index
    %24 = vector.load %arg6[%c0_14, %c0_15] : memref<16x128xf32, #tpu.memory_space<vmem>>, vector<16x128xf32>
    tpu.vector_store %arg6[%c0_14, %c0_15], %23 {strides = array<i32>} : memref<16x128xf32, #tpu.memory_space<vmem>>, vector<16x128xf32>,
    return
  }
  func.func @transform_0(%arg0: i32) -> (i32, i32) {
    %c0_i32 = arith.constant 0 : i32
    %c0_i32_0 = arith.constant 0 : i32
    return %arg0, %c0_i32 : i32, i32
  }
  func.func @transform_1(%arg0: i32) -> (i32, i32) {
    %c0_i32 = arith.constant 0 : i32
    %c0_i32_0 = arith.constant 0 : i32
    %c0_i32_1 = arith.constant 0 : i32
    return %c0_i32, %c0_i32_0 : i32, i32
  }
  func.func @transform_2(%arg0: i32) -> (i32, i32) {
    %c0_i32 = arith.constant 0 : i32
    %c0_i32_0 = arith.constant 0 : i32
    %c0_i32_1 = arith.constant 0 : i32
    return %c0_i32, %c0_i32_0 : i32, i32
  }
  func.func @transform_3(%arg0: i32) -> (i32, i32) {
    %c0_i32 = arith.constant 0 : i32
    %c0_i32_0 = arith.constant 0 : i32
    %c0_i32_1 = arith.constant 0 : i32
    return %c0_i32, %c0_i32_0 : i32, i32
  }
  func.func @transform_4(%arg0: i32) -> (i32, i32) {
    %c0_i32 = arith.constant 0 : i32
    %c0_i32_0 = arith.constant 0 : i32
    %c0_i32_1 = arith.constant 0 : i32
    return %c0_i32, %c0_i32_0 : i32, i32
  }
  func.func @transform_5(%arg0: i32) -> (i32, i32) {
    %c0_i32 = arith.constant 0 : i32
    %c0_i32_0 = arith.constant 0 : i32
    return %arg0, %c0_i32 : i32, i32
  }
}

</mosaic_0001>

<bundles_post_ra>
// kernel: tpu_custom_call.1
= control target key start
LH: loop header
LB: loop body
LE: loop exit
PB: predicated region body
PF: predicated region fallthrough
CT: control target
= control target key end

     0   :  { %10 = vsyncpa [#allocation3], 0  ;;  %s1200_s0 = inlined_call_operand.hbm [shape: f32[32,128], index: 0, kind: input, shape index: {}]   ;;  %s1201_s1 = inlined_call_operand.hbm [shape: f32[128,128], index: 1, kind: input, shape index: {}]   ;;  %s1202_s2 = inlined_call_operand.vmem [shape: f32[1,128], index: 2, kind: input, shape index: {}]   ;;  %s1203_s3 = inlined_call_operand.hbm [shape: f32[128,128], index: 3, kind: input, shape index: {}]   ;;  %s1204_s4 = inlined_call_operand.vmem [shape: f32[1,128], index: 4, kind: input, shape index: {}]   ;;  %s1205_s5 = inlined_call_operand.hbm [shape: f32[32,128], index: 5, kind: output, shape index: {}]  }
   0x1   :  { %12 = vsyncpa [#allocation3 + $0x1], 0 }
   0x2   :  { %13 = vsyncpa [#allocation6], 0 }
   0x3   :  { %14 = vsyncpa [#allocation4], 0 }
   0x4   :  { %16 = vsyncpa [#allocation4 + $0x1], 0  ;;  %s989_s18 = smov 0   ;;  %s991_s19 = smov 0  }
   0x5   :  { %s993_s20 = smov 0   ;;  %s995_s21 = smov 0  }
   0x6 LB: > { %s1010_s22 = sadd.s32 4294967295, %s949_s21   ;;  %s598_s23 = sadd.s32 4294967294, %s949_s21   ;;  %s949_s21 = sphi %s995_s21, %s1228_s21   ;;  %s945_s20 = sphi %s993_s20, %s1227_s20   ;;  %s941_s19 = sphi %s991_s19, %s1226_s19   ;;  %s937_s18 = sphi %s989_s18, %s1225_s18  }
   0x7   : > { %p42_p0 = scmp.ne.s32.totalorder %s941_s19, %s937_s18  ;;  %p1206_p1 = scmp.eq.s32.totalorder %s1010_s22, 0 }
   0x8   : > { %p150_p2 = scmp.eq.s32.totalorder %s1010_s22, 1  ;;  %p156_p3 = scmp.eq.s32.totalorder %s598_s23, 1 }
   0x9   : > { %p1019_p4 = por %p1206_p1, %p42_p0  ;;  %p599_p5 = scmp.ge.s32.totalorder %s949_s21, 1 }
   0xa   : > { %p1024_p6 = por %p156_p3, %p42_p0  ;;  %p163_p7 = scmp.lt.s32.totalorder %s949_s21, 3 }
   0xb   : > { %s1211_s24 = scalar_select %p1019_p4, 1, 0 }
   0xc   : > { %s1212_s25 = scalar_select %p1024_p6, 1, 0 }
   0xd   : > { %p1029_p8 = pnand %p599_p5, %p163_p7  ;;  %s951_s27 = smov [#allocation5]  }
   0xe   : > { %s175_s28 = sshll.u32 %s951_s27, 4  ;;  %s952_s30 = smov [#allocation7]   ;;  %s176_s28 = int_to_ptr.vmem [resolvable:$true] %s175_s28 }
   0xf   : > { %s1213_s26 = scalar_select %p1029_p8, 1, 0 }
  0x10   : > { %p738_p9 = pneg %p1029_p8  ;;  %s191_s6 = sshll.u32 %s952_s30, 4  ;;  %s192_s6 = int_to_ptr.vmem [resolvable:$true] %s191_s6 }
  0x11   : > { %s812_s7 = scalar_lea.vmem %s176_s28, 2048  ;;  %p820_p5 = scmp.lt.s32.totalorder %s176_s28, %s176_s28 }
  0x12   : > { %p1038_p11 = pnand %p738_p9, %p1206_p1  ;;  %p813_p13 = scmp.ne.s32.totalorder %s176_s28, %s812_s7 }
  0x13   : > { %p821_p7 = scmp.lt.s32.totalorder %s812_s7, %s812_s7 }
  0x14   : > { %p803_p12 = pneg %p1038_p11 }
  0x15   : > { %p822_p10 = por %p821_p7, %p820_p5 }
  0x16   : > { %p815_p0 = pnand %p813_p13, %p803_p12 }
  0x18   : > { %p816_p3 = pneg %p815_p0 }
  0x1a   : > { %p823_p9 = pnand %p822_p10, %p816_p3 }
  0x1c   : > { %826 = shalt.err (!%p823_p9)
}
  0x1d   : > { %s1207_s8 = smov 128   ;;  %s954_s9 = smov 8  }
  0x1e   : > { %741 = dma.hbm_to_vmem [thread:$0]  (!%p1038_p11), %s1201_s1, 2048, %s176_s28, [#allocation6], %s1207_s8, %s1207_s8, %s954_s9  }
  0x1f   : > { %s838_s12 = scalar_lea.vmem %s192_s6, 2048  ;;  %p846_p10 = scmp.lt.s32.totalorder %s192_s6, %s192_s6 }
  0x20   : > { %p839_p13 = scmp.ne.s32.totalorder %s192_s6, %s838_s12  ;;  %p847_p3 = scmp.lt.s32.totalorder %s838_s12, %s838_s12 }
  0x22   : > { %p841_p0 = pnand %p839_p13, %p803_p12  ;;  %p848_p7 = por %p847_p3, %p846_p10 }
  0x24   : > { %p842_p5 = pneg %p841_p0 }
  0x26   : > { %p849_p9 = pnand %p848_p7, %p842_p5 }
  0x28   : > { %852 = shalt.err (!%p849_p9)
}
  0x29   : > { %744 = dma.hbm_to_vmem [thread:$0]  (!%p1038_p11), %s1203_s3, 2048, %s192_s6, [#allocation6], %s1207_s8, %s1207_s8, %s954_s9  }
  0x2a   : > { %s1067_s15 = sadd.s32 1, %s949_s21   ;;  %s29_s16 = sadd.s32 1, %s945_s20 }
  0x2b   : > { %s26_s17 = ssub.s32 %s949_s21, %s1067_s15  ;;  %p36_p12 = scmp.ne.s32.totalorder %s945_s20, %s941_s19 }
  0x2c   : > { %p27_p13 = scmp.eq.s32.totalorder %s26_s17, 0  ;;  %p37_p0 = scmp.eq.s32.totalorder %s949_s21, 0 }
  0x2d   : > { %p1077_p5 = por %p150_p2, %p36_p12  ;;  %p755_p10 = scmp.lt.s32.totalorder %s949_s21, 2 }
  0x2e   : > { %s1083_s27 = scalar_select %p27_p13, %s945_s20, %s29_s16  }
  0x2f   : > { %s1215_s23 = scalar_select %p1077_p5, 1, 0 }
  0x30   : > { %p38_p3 = por %p37_p0, %p36_p12  ;;  %s208_s28 = sand.u32 1, %s945_s20  }
  0x31   : > { %s603_s29 = sshll.u32 %s208_s28, 4  ;;  %s618_s30 = sshll.u32 %s949_s21, 8 }
  0x32   : > { %s1090_s10 = scalar_lea.hbm %s1200_s0, %s618_s30  ;;  %s212_s11 = scalar_lea.vmem [#allocation2], %s603_s29 }
  0x33   : > { %s219_s12 = sshll.u32 %s212_s11, 4  ;;  %p1094_p2 = pnand %p755_p10, %p38_p3  ;;  %s1092_s12 = int_to_ptr.vmem [resolvable:$true] %s219_s12 }
  0x34   : > { %s1098_s14 = scalar_lea.sflag [#allocation3], %s208_s28  ;;  %s853_s16 = scalar_lea.hbm %s1090_s10, 256 }
  0x35   : > { %p854_p11 = scmp.ne.s32.totalorder %s1090_s10, %s853_s16  ;;  %p855_p7 = pneg %p1094_p2 }
  0x36   : > { %s858_s29 = scalar_lea.hbm %s1200_s0, 512  ;;  %p859_p13 = scmp.lt.s32.totalorder %s1090_s10, %s1200_s0 }
  0x37   : > { %p856_p9 = pnand %p855_p7, %p854_p11  ;;  %p860_p0 = scmp.lt.s32.totalorder %s858_s29, %s853_s16 }
  0x39   : > { %p857_p12 = pneg %p856_p9  ;;  %p861_p10 = por %p860_p0, %p859_p13 }
  0x3b   : > { %p862_p3 = pnand %p861_p10, %p857_p12 }
  0x3d   : > { %865 = shalt.err (!%p862_p3)
}
  0x3e   : > { %s866_s28 = scalar_lea.vmem %s1092_s12, 256  ;;  %s955_s11 = smov [#allocation2]  }
  0x3f   : > { %p867_p1 = scmp.ne.s32.totalorder %s1092_s12, %s866_s28  ;;  %s871_s8 = sshll.u32 %s955_s11, 4  ;;  %s872_s8 = int_to_ptr.vmem [resolvable:$false] %s871_s8 }
  0x40   : > { %s873_s17 = scalar_lea.vmem %s872_s8, 512  ;;  %p874_p9 = scmp.lt.s32.totalorder %s1092_s12, %s872_s8 }
  0x41   : > { %p869_p6 = pnand %p867_p1, %p855_p7  ;;  %p875_p5 = scmp.lt.s32.totalorder %s873_s17, %s866_s28 }
  0x43   : > { %p870_p11 = pneg %p869_p6  ;;  %p876_p4 = por %p875_p5, %p874_p9 }
  0x45   : > { %p877_p8 = pnand %p876_p4, %p870_p11 }
  0x47   : > { %880 = shalt.err (!%p877_p8)
}
  0x48   : > { %s1217_s16 = smov 128   ;;  %p1218_p1 = scmp.ne.s32.totalorder %s1213_s26, 0 }
  0x49   : > { %748 = dma.hbm_to_vmem [thread:$0]  (!%p1094_p2), %s1090_s10, 256, %s1092_s12, %s1098_s14, %s1217_s16, %s1217_s16, %s954_s9  }
  0x4a   : > { %231 = sbr.rel (%p1218_p1) target bundleno = 553 (0x229), region = 40  ;;  %s1125_s30 = sand.u32 (!%p1218_p1), 1, %s941_s19  }
  0x4b   : > { %s607_s8 = sshll.u32 (!%p1218_p1), %s1125_s30, 4  ;;  %s234_s29 = scalar_lea.sflag (!%p1218_p1), [#allocation3], %s1125_s30 }
  0x4c   : > { %s1131_s13 = scalar_lea.vmem (!%p1218_p1), [#allocation2], %s607_s8  ;;  %p1219_p4 = scmp.ne.s32.totalorder (!%p1218_p1), %s1211_s24, 0 }
  0x4f   : > { %924 = dma.done.wait (%p1219_p4), %s234_s29, 256  }
  0x50   : > { %926 = vsyncadd (%p1219_p4), %s234_s29, 4294967040  ;;  %p1220_p6 = scmp.eq.s32.totalorder %s1010_s22, 0 }
  0x52   : > { %928 = dma.done.wait (%p1220_p6), [#allocation6], 4096   ;;  %p1221_p8 = pmov %p1220_p6 }
  0x53   : > { %v291_v0 = vld [vmem:[#allocation5 + $0x78] sm:$0xff]  ;;  %v290_v1 = vld [vmem:[#allocation5 + $0x70] sm:$0xff]  ;;  %v289_v2 = vld [vmem:[#allocation5 + $0x68] sm:$0xff]  ;;  %s271_s12 = scalar_lea.vmem [#allocation8], %s607_s8  ;;  %s619_s6 = sshll.u32 %s1010_s22, 8 }
  0x54   : > { %930 = vsyncadd (%p1221_p8), [#allocation6], 4294963200  ;;  %656 = vmatprep.subr.mxu0 %v291_v0  ;;  %v288_v3 = vld [vmem:[#allocation5 + $0x60] sm:$0xff]  ;;  %v287_v5 = vld [vmem:[#allocation5 + $0x58] sm:$0xff]  ;;  %s506_s14 = sshll.u32 %s271_s12, 4  ;;  %s1157_s11 = scalar_lea.hbm %s1205_s5, %s619_s6  ;;  %s1152_s14 = int_to_ptr.vmem [resolvable:$true] %s506_s14 }
  0x55   : > { %657 = vmatpush3.msra.mxu0 %v291_v0  ;;  %v274_v4 = vld [vmem:[%s1131_s13] sm:$0xff]  ;;  %v285_v7 = vld [vmem:[#allocation5 + $0x48] sm:$0xff]  ;;  %v283_v9 = vld [vmem:[#allocation5 + $0x38] sm:$0xff]  ;;  %s493_s17 = scalar_lea.sflag [#allocation4], %s1125_s30  ;;  %s881_s16 = scalar_lea.vmem %s1152_s14, 256 }
  0x56   : > { %658 = vmatprep.subr.mxu0 %v290_v1  ;;  %688 = vmatprep.mubr.f32.mxu0 %v274_v4  ;;  %v286_v6 = vld [vmem:[#allocation5 + $0x50] sm:$0xff]  ;;  %v284_v8 = vld [vmem:[#allocation5 + $0x40] sm:$0xff]  ;;  %v281_v11 = vld [vmem:[#allocation5 + $0x28] sm:$0xff]  ;;  %p882_p5 = scmp.ne.s32.totalorder %s1152_s14, %s881_s16  ;;  %p1222_p2 = scmp.ne.s32.totalorder %s1215_s23, 0 }
  0x57   : > { %659 = vmatpush3.msra.mxu0 %v290_v1  ;;  %v282_v10 = vld [vmem:[#allocation5 + $0x30] sm:$0xff]  ;;  %v280_v12 = vld [vmem:[#allocation5 + $0x20] sm:$0xff]  ;;  %v279_v13 = vld [vmem:[#allocation5 + $0x18] sm:$0xff]  ;;  %s956_s22 = smov [#allocation8]  }
  0x58   : > { %660 = vmatprep.subr.mxu0 %v289_v2  ;;  %v278_v14 = vld [vmem:[#allocation5 + $0x10] sm:$0xff]  ;;  %v277_v15 = vld [vmem:[#allocation5 + $0x8] sm:$0xff]  ;;  %v276_v16 = vld [vmem:[#allocation5] sm:$0xff]  ;;  %p883_p7 = pnand %p882_p5, %p1222_p2  ;;  %s885_s8 = sshll.u32 %s956_s22, 4  ;;  %s886_s8 = int_to_ptr.vmem [resolvable:$false] %s885_s8 }
  0x59   : > { %661 = vmatpush3.msra.mxu0 %v289_v2  ;;  %v275_v17 = vld [vmem:[%s1131_s13 + $0x8] sm:$0xff]  ;;  %v406_v19 = vld [vmem:[#allocation7 + $0x70] sm:$0xff]  ;;  %v404_v21 = vld [vmem:[#allocation7 + $0x60] sm:$0xff]  ;;  %s887_s29 = scalar_lea.vmem %s886_s8, 512  ;;  %p888_p13 = scmp.lt.s32.totalorder %s1152_s14, %s886_s8 }
  0x5a   : > { %662 = vmatprep.subr.mxu0 %v288_v3  ;;  %v407_v18 = vld [vmem:[#allocation7 + $0x78] sm:$0xff]  ;;  %v405_v20 = vld [vmem:[#allocation7 + $0x68] sm:$0xff]  ;;  %v402_v23 = vld [vmem:[#allocation7 + $0x50] sm:$0xff]  ;;  %p884_p12 = pneg %p883_p7  ;;  %p889_p0 = scmp.lt.s32.totalorder %s887_s29, %s881_s16 }
  0x5b   : > { %663 = vmatpush3.msra.mxu0 %v288_v3  ;;  %691 = vmatprep.subr.mxu1 %v407_v18  ;;  %v403_v22 = vld [vmem:[#allocation7 + $0x58] sm:$0xff]  ;;  %v401_v24 = vld [vmem:[#allocation7 + $0x48] sm:$0xff]  ;;  %v400_v25 = vld [vmem:[#allocation7 + $0x40] sm:$0xff] }
  0x5c   : > { %664 = vmatprep.subr.mxu0 %v287_v5  ;;  %692 = vmatpush3.msra.mxu1 %v407_v18  ;;  %v399_v26 = vld [vmem:[#allocation7 + $0x38] sm:$0xff]  ;;  %v398_v27 = vld [vmem:[#allocation7 + $0x30] sm:$0xff]  ;;  %v397_v28 = vld [vmem:[#allocation7 + $0x28] sm:$0xff]  ;;  %p890_p10 = por %p889_p0, %p888_p13 }
  0x5d   : > { %665 = vmatpush3.msra.mxu0 %v287_v5  ;;  %693 = vmatprep.subr.mxu1 %v406_v19  ;;  %v396_v29 = vld [vmem:[#allocation7 + $0x20] sm:$0xff]  ;;  %v395_v30 = vld [vmem:[#allocation7 + $0x18] sm:$0xff]  ;;  %v394_v31 = vld [vmem:[#allocation7 + $0x10] sm:$0xff] }
  0x5e   : > { %666 = vmatprep.subr.mxu0 %v286_v6  ;;  %694 = vmatpush3.msra.mxu1 %v406_v19  ;;  %v393_v32 = vld [vmem:[#allocation7 + $0x8] sm:$0xff]  ;;  %v392_v33 = vld [vmem:[#allocation7] sm:$0xff]  ;;  %p891_p3 = pnand %p890_p10, %p884_p12 }
  0x5f   : > { %667 = vmatpush3.msra.mxu0 %v286_v6  ;;  %695 = vmatprep.subr.mxu1 %v405_v20  ;;  %v611_v34 = vld [vmem:[%s1202_s2] ss:$0 sm:$0xff] }
  0x60   : > { %668 = vmatprep.subr.mxu0 %v285_v7  ;;  %696 = vmatpush3.msra.mxu1 %v405_v20  ;;  %v612_v57 = vld [vmem:[%s1204_s4] ss:$0 sm:$0xff] }
  0x61   : > { %669 = vmatpush3.msra.mxu0 %v285_v7  ;;  %697 = vmatprep.subr.mxu1 %v404_v21 }
  0x62   : > { %670 = vmatprep.subr.mxu0 %v284_v8  ;;  %698 = vmatpush3.msra.mxu1 %v404_v21 }
  0x63   : > { %671 = vmatpush3.msra.mxu0 %v284_v8  ;;  %699 = vmatprep.subr.mxu1 %v403_v22 }
  0x64   : > { %672 = vmatprep.subr.mxu0 %v283_v9  ;;  %700 = vmatpush3.msra.mxu1 %v403_v22 }
  0x65   : > { %673 = vmatpush3.msra.mxu0 %v283_v9  ;;  %701 = vmatprep.subr.mxu1 %v402_v23 }
  0x66   : > { %674 = vmatprep.subr.mxu0 %v282_v10  ;;  %702 = vmatpush3.msra.mxu1 %v402_v23 }
  0x67   : > { %675 = vmatpush3.msra.mxu0 %v282_v10  ;;  %703 = vmatprep.subr.mxu1 %v401_v24 }
  0x68   : > { %676 = vmatprep.subr.mxu0 %v281_v11  ;;  %704 = vmatpush3.msra.mxu1 %v401_v24 }
  0x69   : > { %677 = vmatpush3.msra.mxu0 %v281_v11  ;;  %705 = vmatprep.subr.mxu1 %v400_v25 }
  0x6a   : > { %678 = vmatprep.subr.mxu0 %v280_v12  ;;  %706 = vmatpush3.msra.mxu1 %v400_v25 }
  0x6b   : > { %679 = vmatpush3.msra.mxu0 %v280_v12  ;;  %707 = vmatprep.subr.mxu1 %v399_v26 }
  0x6c   : > { %680 = vmatprep.subr.mxu0 %v279_v13  ;;  %708 = vmatpush3.msra.mxu1 %v399_v26 }
  0x6d   : > { %681 = vmatpush3.msra.mxu0 %v279_v13  ;;  %709 = vmatprep.subr.mxu1 %v398_v27 }
  0x6e   : > { %682 = vmatprep.subr.mxu0 %v278_v14  ;;  %710 = vmatpush3.msra.mxu1 %v398_v27 }
  0x6f   : > { %683 = vmatpush3.msra.mxu0 %v278_v14  ;;  %711 = vmatprep.subr.mxu1 %v397_v28 }
  0x70   : > { %684 = vmatprep.subr.mxu0 %v277_v15  ;;  %712 = vmatpush3.msra.mxu1 %v397_v28 }
  0x71   : > { %685 = vmatpush3.msra.mxu0 %v277_v15  ;;  %713 = vmatprep.subr.mxu1 %v396_v29 }
  0x72   : > { %686 = vmatprep.subr.mxu0 %v276_v16  ;;  %714 = vmatpush3.msra.mxu1 %v396_v29 }
  0x73   : > { %687 = vmatpush3.msra.mxu0 %v276_v16  ;;  %715 = vmatprep.subr.mxu1 %v395_v30 }
  0x74   : > { %689 = vmatmul.mubr.f32.vlgmr.msra.gmra.mxu0 %v275_v17  ;;  %716 = vmatpush3.msra.mxu1 %v395_v30 }
  0x75   : > { %717 = vmatprep.subr.mxu1 %v394_v31 }
  0x76   : > { %718 = vmatpush3.msra.mxu1 %v394_v31 }
  0x77   : > { %719 = vmatprep.subr.mxu1 %v393_v32 }
  0x78   : > { %720 = vmatpush3.msra.mxu1 %v393_v32 }
  0x79   : > { %721 = vmatprep.subr.mxu1 %v392_v33 }
  0x7a   : > { %722 = vmatpush3.msra.mxu1 %v392_v33 }
 0x134   : > { %v690_v35 = vpop.f32.mrf.mxu0 }
 0x135   : > { %v371_v36 = vadd.f32 %v690_v35, %v611_v34 }
 0x136   : > { %v365_v37 = vpop.f32.mrf.mxu0 }
 0x137   : > { %v377_v38 = vmul.f32 0.044715, %v371_v36  ;;  %v366_v39 = vadd.f32 %v611_v34, %v365_v37  ;;  %v375_v54 = vmul.f32 0.5, %v371_v36 }
 0x139   : > { %v379_v40 = vmul.f32 %v377_v38, %v371_v36  ;;  %v376_v41 = vmul.f32 0.044715, %v366_v39  ;;  %v374_v52 = vmul.f32 0.5, %v366_v39 }
 0x13b   : > { %v378_v42 = vmul.f32 %v376_v41, %v366_v39  ;;  %v381_v43 = vmul.f32 %v379_v40, %v371_v36 }
 0x13d   : > { %v380_v44 = vmul.f32 %v378_v42, %v366_v39  ;;  %v383_v45 = vadd.f32 %v381_v43, %v371_v36 }
 0x13f   : > { %v382_v46 = vadd.f32 %v380_v44, %v366_v39  ;;  %v385_v47 = vmul.f32 0.7978846, %v383_v45 }
 0x141   : > { %v384_v48 = vmul.f32 0.7978846, %v382_v46  ;;  %797 = vtanh.f32 %v385_v47 }
 0x143   : > { %799 = vtanh.f32 %v384_v48 }
 0x14e   : > { %v798_v49 = vpop.eup %797 }
 0x14f   : > { %v389_v51 = vadd.f32 1.0, %v798_v49 }
 0x150   : > { %v800_v50 = vpop.eup %799 }
 0x151   : > { %v388_v53 = vadd.f32 1.0, %v800_v50  ;;  %v391_v56 = vmul.f32 %v389_v51, %v375_v54 }
 0x153   : > { %v390_v55 = vmul.f32 %v388_v53, %v374_v52 }
 0x155   : > { %723 = vmatprep.mubr.f32.mxu1 %v390_v55 }
 0x156   : > { %724 = vmatmul.mubr.f32.vlgmr.msra.gmra.mxu1 %v391_v56 }
 0x216   : > { %v725_v58 = vpop.f32.mrf.mxu1 }
 0x217   : > { %v487_v59 = vadd.f32 %v725_v58, %v612_v57 }
 0x218   : > { %v481_v60 = vpop.f32.mrf.mxu1 }
 0x219   : > { %491 = vst [vmem:[%s271_s12 + $0x8] sm:$0xff] %v487_v59  ;;  %v482_v61 = vadd.f32 %v612_v57, %v481_v60 }
 0x21b   : > { %490 = vst [vmem:[%s271_s12] sm:$0xff] %v482_v61 }
 0x21c   : > { %894 = shalt.err (!%p891_p3)
}
 0x21d   : > { %s895_s13 = scalar_lea.hbm %s1157_s11, 256  ;;  %s899_s9 = scalar_lea.hbm %s1205_s5, 512 }
 0x21e   : > { %p896_p11 = scmp.ne.s32.totalorder %s1157_s11, %s895_s13  ;;  %p900_p4 = scmp.lt.s32.totalorder %s1157_s11, %s1205_s5 }
 0x21f   : > { %p901_p6 = scmp.lt.s32.totalorder %s899_s9, %s895_s13 }
 0x220   : > { %p897_p9 = pnand %p896_p11, %p1222_p2 }
 0x221   : > { %p902_p8 = por %p901_p6, %p900_p4 }
 0x222   : > { %p898_p1 = pneg %p897_p9 }
 0x224   : > { %p903_p5 = pnand %p902_p8, %p898_p1 }
 0x226   : > { %906 = shalt.err (!%p903_p5)
}
 0x227   : > { %s957_s6 = smov 128   ;;  %s958_s7 = smov 8  }
 0x228   : > { %736 = dma.vmem_to_hbm [thread:$0]  (%p1222_p2), %s1152_s14, 256, %s1157_s11, %s493_s17, %s957_s6, %s957_s6, %s958_s7  }
 0x229 PF: > { %s521_s28 = sand.u32 1, %s937_s18   ;;  %p1223_p7 = scmp.ne.s32.totalorder %s1212_s25, 0 }
 0x22a   : > { %p1224_p12 = scmp.ge.s32.totalorder %s949_s21, 2  ;;  %s522_s16 = scalar_lea.sflag [#allocation4], %s521_s28 }
 0x22c   : > { %p750_p13 = pnand %p1224_p12, %p1223_p7 }
 0x22e   : > { %p751_p0 = pneg %p750_p13 }
 0x230   : > { %932 = dma.done.wait (%p751_p0), %s522_s16, 256  }
 0x231   : > { %934 = vsyncadd (%p751_p0), %s522_s16, 4294967040  ;;  %p19_p10 = scmp.ge.s32.totalorder %s1067_s15, 4   ;;  %s1225_s18 = smov %s941_s19 }
 0x232   : > { %s1226_s19 = smov %s945_s20  ;;  %s1227_s20 = smov %s1083_s27 }
 0x233   : > { %s1228_s21 = smov %s1067_s15  ;;  %21 = sbr.rel (!%p19_p10) target bundleno = 6 (0x6), region = 93 }
 0x238   :  { %527 = vsyncpa [#allocation3], 1 }
 0x239   :  { %529 = vsyncpa [#allocation3 + $0x1], 1 }
 0x23a   :  { %530 = vsyncpa [#allocation6], 1 }
 0x23b   :  { %531 = vsyncpa [#allocation4], 1 }
 0x23c   :  { %533 = vsyncpa [#allocation4 + $0x1], 1 }

</bundles_post_ra>
